<compile_context>
chip_gen: v6e
topology: v6e:2x2x1
jax: 0.10.0
libtpu: 0.0.40
codegen_flags: <defaults>
</compile_context>

<pallas_src>
import functools

import jax
import jax.numpy as jnp
from jax.experimental import pallas as pl
from jax.experimental.pallas import tpu as pltpu

# MLP dims of gpnet2_2_3.mynet:
#   Linear(2,30) Tanh  Linear(30,20) Tanh  Linear(20,6) Tanh
#   Linear(6,2)  Sigmoid  Linear(2,2)
DIMS = [2, 30, 20, 6, 2, 2]
# Feature dims padded up to sublane multiples of 8 for the feature-major layout.
PAD_DIMS = [-(-d // 8) * 8 for d in DIMS]   # [8, 32, 24, 8, 8, 8]


def _mlp_kernel(x_ref,
                w1_ref, b1_ref,
                w2_ref, b2_ref,
                w3_ref, b3_ref,
                w4_ref, b4_ref,
                w5_ref, b5_ref,
                o_ref):
    """Fused 5-layer MLP (tanh, tanh, tanh, sigmoid, linear).

    Feature-major layout: activations are [features_padded, row_tile] so the
    row dimension occupies the 128-lane axis. Each layer computes
        H_l = act(W_l^T @ H_{l-1} + b_l)
    where W_l^T is the zero-padded [out_pad, in_pad] weight and b_l is an
    [out_pad, 1] column bias broadcast across lanes.
    """
    h = x_ref[...]                                               # [8, T]

    h = jnp.tanh(
        jnp.dot(w1_ref[...], h, preferred_element_type=jnp.float32)
        + b1_ref[...])                                           # [32, T]
    h = jnp.tanh(
        jnp.dot(w2_ref[...], h, preferred_element_type=jnp.float32)
        + b2_ref[...])                                           # [24, T]
    h = jnp.tanh(
        jnp.dot(w3_ref[...], h, preferred_element_type=jnp.float32)
        + b3_ref[...])                                           # [8, T]

    z = (jnp.dot(w4_ref[...], h, preferred_element_type=jnp.float32)
         + b4_ref[...])                                          # [8, T]
    # sigmoid via EUP exp + approximate EUP reciprocal (keeps divide off VPU).
    h = pl.reciprocal(1.0 + jnp.exp(-z), approx=True)

    h = (jnp.dot(w5_ref[...], h, preferred_element_type=jnp.float32)
         + b5_ref[...])                                          # [8, T]

    o_ref[...] = h.astype(o_ref.dtype)


def _pad_params(params):
    """Transpose to [out, in] (so kernel does W^T @ H) and zero-pad feature
    dims to multiples of 8. Biases become [out_pad, 1] column vectors."""
    padded = []
    for li in range(5):
        din, dout = DIMS[li], DIMS[li + 1]
        pin, pout = PAD_DIMS[li], PAD_DIMS[li + 1]
        w = params[f"w{li + 1}"]        # stored [in, out]
        b = params[f"b{li + 1}"]        # stored [1, out]
        wt = jnp.zeros((pout, pin), jnp.float32)
        wt = wt.at[:dout, :din].set(w.astype(jnp.float32).T)
        bt = jnp.zeros((pout, 1), jnp.float32)
        bt = bt.at[:dout, 0].set(b.astype(jnp.float32).reshape(-1))
        padded += [wt, bt]
    return padded


@functools.partial(jax.jit, static_argnames=("row_tile",))
def gpnet2_2_3_forward(x_train, params, *, row_tile=1024):
    """Runs the x_train branch of gpnet2_2_3.forward: returns mynet(x_train).

    x_train: [N, 2]. N may be ragged; it is zero-padded to a multiple of
    row_tile and the padding is sliced off the result.
    """
    n, d_in = x_train.shape
    assert d_in == DIMS[0]
    assert row_tile % 128 == 0, "row_tile must be a multiple of 128 (lane dim)"

    n_pad = pl.cdiv(n, row_tile) * row_tile
    in_pad, out_pad = PAD_DIMS[0], PAD_DIMS[-1]

    # Feature-major, lane-dense input: [in_pad, n_pad], padded with zeros.
    xt = jnp.zeros((in_pad, n_pad), jnp.float32)
    xt = xt.at[:d_in, :n].set(x_train.astype(jnp.float32).T)

    weights_and_biases = _pad_params(params)

    in_specs = [
        # x tile: grid over the lane (row) axis only; feature axis whole.
        pl.BlockSpec((in_pad, row_tile), lambda i: (0, i)),
    ]
    for op in weights_and_biases:
        # Full (untiled) weight / bias blocks; constant index_map keeps them
        # resident in VMEM across grid steps (no re-DMA).
        in_specs.append(pl.BlockSpec(op.shape, lambda i: (0, 0)))

    out_padded = pl.pallas_call(
        _mlp_kernel,
        out_shape=jax.ShapeDtypeStruct((out_pad, n_pad), jnp.float32),
        grid_spec=pltpu.PrefetchScalarGridSpec(
            num_scalar_prefetch=0,
            grid=(n_pad // row_tile,),
            in_specs=in_specs,
            # Lane-dense output block: last dim = row_tile (multiple of 128),
            # so stores are full-width (no masked vst.msk partial stores).
            out_specs=pl.BlockSpec((out_pad, row_tile), lambda i: (0, i)),
        ),
        compiler_params=pltpu.CompilerParams(
            dimension_semantics=("parallel",)),
    )(xt, *weights_and_biases)

    # Drop feature padding and row padding; return row-major [N, 2].
    return out_padded[:DIMS[-1], :n].T


def init_params(key):
    """Deterministic init mimicking PyTorch's default Linear init
    (uniform(-1/sqrt(fan_in), 1/sqrt(fan_in)))."""
    params = {}
    for li in range(5):
        fan_in, fan_out = DIMS[li], DIMS[li + 1]
        key, kw, kb = jax.random.split(key, 3)
        bound = 1.0 / jnp.sqrt(fan_in)
        # stored as [in, out] so the reference does x @ W
        params[f"w{li + 1}"] = jax.random.uniform(
            kw, (fan_in, fan_out), jnp.float32, -bound, bound)
        params[f"b{li + 1}"] = jax.random.uniform(
            kb, (1, fan_out), jnp.float32, -bound, bound)
    return params


def reference_forward(x, params):
    h = x
    acts = [jnp.tanh, jnp.tanh, jnp.tanh, jax.nn.sigmoid, lambda v: v]
    for li, act in enumerate(acts):
        h = act(h @ params[f"w{li + 1}"] + params[f"b{li + 1}"])
    return h


if __name__ == "__main__":
    key = jax.random.PRNGKey(0)
    key, kx = jax.random.split(key)

    # x_train: [N, 2] — 2-D input coordinates, as implied by Linear(2, 30).
    # N is deliberately NOT a multiple of row_tile to exercise ragged padding;
    # row_tile=512 -> 2 grid steps (keeps both v7x TensorCores busy).
    N = 1000
    x_train = jax.random.normal(kx, (N, DIMS[0]), jnp.float32)

    params = init_params(key)

    out = gpnet2_2_3_forward(x_train, params, row_tile=512)
    out = jax.block_until_ready(out)

    ref = reference_forward(x_train, params)
    assert out.shape == (N, DIMS[-1])
    max_err = float(jnp.max(jnp.abs(out - ref)))
    # Tolerance accounts for the approximate EUP reciprocal in the sigmoid.
    assert jnp.allclose(out, ref, atol=2e-3, rtol=2e-3), max_err

    print("KERNEL_OK")
</pallas_src>

<mosaic_0001>
module attributes {stable_mosaic.version = 11 : i64} {
  func.func @_mlp_kernel(%arg0: i32, %arg1: memref<8x512xf32, #tpu.memory_space<vmem>>, %arg2: memref<32x8xf32, #tpu.memory_space<vmem>>, %arg3: memref<32x1xf32, #tpu.memory_space<vmem>>, %arg4: memref<24x32xf32, #tpu.memory_space<vmem>>, %arg5: memref<24x1xf32, #tpu.memory_space<vmem>>, %arg6: memref<8x24xf32, #tpu.memory_space<vmem>>, %arg7: memref<8x1xf32, #tpu.memory_space<vmem>>, %arg8: memref<8x8xf32, #tpu.memory_space<vmem>>, %arg9: memref<8x1xf32, #tpu.memory_space<vmem>>, %arg10: memref<8x8xf32, #tpu.memory_space<vmem>>, %arg11: memref<8x1xf32, #tpu.memory_space<vmem>>, %arg12: memref<8x512xf32, #tpu.memory_space<vmem>>) attributes {dimension_semantics = [#tpu.dimension_semantics<parallel>], iteration_bounds = array<i64: 2>, scalar_prefetch = 0 : i64, scratch_operands = 0 : i64, tpu.core_type = #tpu.core_type<tc>, window_params = [{transform_indices = @transform_0, window_bounds = array<i64: 8, 512>}, {pipeline_mode = #tpu.pipeline_mode<synchronous>, transform_indices = @transform_1, window_bounds = array<i64: 32, 8>}, {pipeline_mode = #tpu.pipeline_mode<synchronous>, transform_indices = @transform_2, window_bounds = array<i64: 32, 1>}, {pipeline_mode = #tpu.pipeline_mode<synchronous>, transform_indices = @transform_3, window_bounds = array<i64: 24, 32>}, {pipeline_mode = #tpu.pipeline_mode<synchronous>, transform_indices = @transform_4, window_bounds = array<i64: 24, 1>}, {pipeline_mode = #tpu.pipeline_mode<synchronous>, transform_indices = @transform_5, window_bounds = array<i64: 8, 24>}, {pipeline_mode = #tpu.pipeline_mode<synchronous>, transform_indices = @transform_6, window_bounds = array<i64: 8, 1>}, {pipeline_mode = #tpu.pipeline_mode<synchronous>, transform_indices = @transform_7, window_bounds = array<i64: 8, 8>}, {pipeline_mode = #tpu.pipeline_mode<synchronous>, transform_indices = @transform_8, window_bounds = array<i64: 8, 1>}, {pipeline_mode = #tpu.pipeline_mode<synchronous>, transform_indices = @transform_9, window_bounds = array<i64: 8, 8>}, {pipeline_mode = #tpu.pipeline_mode<synchronous>, transform_indices = @transform_10, window_bounds = array<i64: 8, 1>}, {transform_indices = @transform_11, window_bounds = array<i64: 8, 512>}]} {
    %c0 = arith.constant 0 : index
    %c0_0 = arith.constant 0 : index
    %0 = vector.load %arg1[%c0, %c0_0] : memref<8x512xf32, #tpu.memory_space<vmem>>, vector<8x512xf32>
    %c0_1 = arith.constant 0 : index
    %c0_2 = arith.constant 0 : index
    %1 = vector.load %arg2[%c0_1, %c0_2] : memref<32x8xf32, #tpu.memory_space<vmem>>, vector<32x8xf32>
    %cst = arith.constant dense<0.000000e+00> : vector<32x512xf32>
    %2 = tpu.matmul %1, %0, %cst {dimension_numbers = #tpu.dot_dimension_numbers<[1], [0], [0], [1], [0, 0, 1, 1], [], []>} : vector<32x8xf32>, vector<8x512xf32>, vector<32x512xf32> -> vector<32x512xf32>
    %c0_3 = arith.constant 0 : index
    %c0_4 = arith.constant 0 : index
    %3 = vector.load %arg3[%c0_3, %c0_4] : memref<32x1xf32, #tpu.memory_space<vmem>>, vector<32x1xf32>
    %4 = vector.broadcast %3 : vector<32x1xf32> to vector<32x512xf32>
    %5 = arith.addf %2, %4 : vector<32x512xf32>
    %6 = math.tanh %5 : vector<32x512xf32>
    %c0_5 = arith.constant 0 : index
    %c0_6 = arith.constant 0 : index
    %7 = vector.load %arg4[%c0_5, %c0_6] : memref<24x32xf32, #tpu.memory_space<vmem>>, vector<24x32xf32>
    %cst_7 = arith.constant dense<0.000000e+00> : vector<24x512xf32>
    %8 = tpu.matmul %7, %6, %cst_7 {dimension_numbers = #tpu.dot_dimension_numbers<[1], [0], [0], [1], [0, 0, 1, 1], [], []>} : vector<24x32xf32>, vector<32x512xf32>, vector<24x512xf32> -> vector<24x512xf32>
    %c0_8 = arith.constant 0 : index
    %c0_9 = arith.constant 0 : index
    %9 = vector.load %arg5[%c0_8, %c0_9] : memref<24x1xf32, #tpu.memory_space<vmem>>, vector<24x1xf32>
    %10 = vector.broadcast %9 : vector<24x1xf32> to vector<24x512xf32>
    %11 = arith.addf %8, %10 : vector<24x512xf32>
    %12 = math.tanh %11 : vector<24x512xf32>
    %c0_10 = arith.constant 0 : index
    %c0_11 = arith.constant 0 : index
    %13 = vector.load %arg6[%c0_10, %c0_11] : memref<8x24xf32, #tpu.memory_space<vmem>>, vector<8x24xf32>
    %cst_12 = arith.constant dense<0.000000e+00> : vector<8x512xf32>
    %14 = tpu.matmul %13, %12, %cst_12 {dimension_numbers = #tpu.dot_dimension_numbers<[1], [0], [0], [1], [0, 0, 1, 1], [], []>} : vector<8x24xf32>, vector<24x512xf32>, vector<8x512xf32> -> vector<8x512xf32>
    %c0_13 = arith.constant 0 : index
    %c0_14 = arith.constant 0 : index
    %15 = vector.load %arg7[%c0_13, %c0_14] : memref<8x1xf32, #tpu.memory_space<vmem>>, vector<8x1xf32>
    %16 = vector.broadcast %15 : vector<8x1xf32> to vector<8x512xf32>
    %17 = arith.addf %14, %16 : vector<8x512xf32>
    %18 = math.tanh %17 : vector<8x512xf32>
    %c0_15 = arith.constant 0 : index
    %c0_16 = arith.constant 0 : index
    %19 = vector.load %arg8[%c0_15, %c0_16] : memref<8x8xf32, #tpu.memory_space<vmem>>, vector<8x8xf32>
    %cst_17 = arith.constant dense<0.000000e+00> : vector<8x512xf32>
    %20 = tpu.matmul %19, %18, %cst_17 {dimension_numbers = #tpu.dot_dimension_numbers<[1], [0], [0], [1], [0, 0, 1, 1], [], []>} : vector<8x8xf32>, vector<8x512xf32>, vector<8x512xf32> -> vector<8x512xf32>
    %c0_18 = arith.constant 0 : index
    %c0_19 = arith.constant 0 : index
    %21 = vector.load %arg9[%c0_18, %c0_19] : memref<8x1xf32, #tpu.memory_space<vmem>>, vector<8x1xf32>
    %22 = vector.broadcast %21 : vector<8x1xf32> to vector<8x512xf32>
    %23 = arith.addf %20, %22 : vector<8x512xf32>
    %cst_20 = arith.constant 0.000000e+00 : f32
    %24 = vector.broadcast %cst_20 : f32 to vector<8x512xf32>
    %25 = arith.subf %24, %23 : vector<8x512xf32>
    %26 = math.exp %25 : vector<8x512xf32>
    %cst_21 = arith.constant 1.000000e+00 : f32
    %27 = vector.broadcast %cst_21 : f32 to vector<8x512xf32>
    %28 = arith.addf %27, %26 : vector<8x512xf32>
    %29 = tpu.reciprocal %28 {approx = true} : vector<8x512xf32> -> vector<8x512xf32>
    %c0_22 = arith.constant 0 : index
    %c0_23 = arith.constant 0 : index
    %30 = vector.load %arg10[%c0_22, %c0_23] : memref<8x8xf32, #tpu.memory_space<vmem>>, vector<8x8xf32>
    %cst_24 = arith.constant dense<0.000000e+00> : vector<8x512xf32>
    %31 = tpu.matmul %30, %29, %cst_24 {dimension_numbers = #tpu.dot_dimension_numbers<[1], [0], [0], [1], [0, 0, 1, 1], [], []>} : vector<8x8xf32>, vector<8x512xf32>, vector<8x512xf32> -> vector<8x512xf32>
    %c0_25 = arith.constant 0 : index
    %c0_26 = arith.constant 0 : index
    %32 = vector.load %arg11[%c0_25, %c0_26] : memref<8x1xf32, #tpu.memory_space<vmem>>, vector<8x1xf32>
    %33 = vector.broadcast %32 : vector<8x1xf32> to vector<8x512xf32>
    %34 = arith.addf %31, %33 : vector<8x512xf32>
    %c0_27 = arith.constant 0 : index
    %c0_28 = arith.constant 0 : index
    %35 = vector.load %arg12[%c0_27, %c0_28] : memref<8x512xf32, #tpu.memory_space<vmem>>, vector<8x512xf32>
    tpu.vector_store %arg12[%c0_27, %c0_28], %34 {strides = array<i32>} : memref<8x512xf32, #tpu.memory_space<vmem>>, vector<8x512xf32>,
    return
  }
  func.func @transform_0(%arg0: i32) -> (i32, i32) {
    %c0_i32 = arith.constant 0 : i32
    %c0_i32_0 = arith.constant 0 : i32
    return %c0_i32, %arg0 : i32, i32
  }
  func.func @transform_1(%arg0: i32) -> (i32, i32) {
    %c0_i32 = arith.constant 0 : i32
    %c0_i32_0 = arith.constant 0 : i32
    %c0_i32_1 = arith.constant 0 : i32
    return %c0_i32, %c0_i32_0 : i32, i32
  }
  func.func @transform_2(%arg0: i32) -> (i32, i32) {
    %c0_i32 = arith.constant 0 : i32
    %c0_i32_0 = arith.constant 0 : i32
    %c0_i32_1 = arith.constant 0 : i32
    return %c0_i32, %c0_i32_0 : i32, i32
  }
  func.func @transform_3(%arg0: i32) -> (i32, i32) {
    %c0_i32 = arith.constant 0 : i32
    %c0_i32_0 = arith.constant 0 : i32
    %c0_i32_1 = arith.constant 0 : i32
    return %c0_i32, %c0_i32_0 : i32, i32
  }
  func.func @transform_4(%arg0: i32) -> (i32, i32) {
    %c0_i32 = arith.constant 0 : i32
    %c0_i32_0 = arith.constant 0 : i32
    %c0_i32_1 = arith.constant 0 : i32
    return %c0_i32, %c0_i32_0 : i32, i32
  }
  func.func @transform_5(%arg0: i32) -> (i32, i32) {
    %c0_i32 = arith.constant 0 : i32
    %c0_i32_0 = arith.constant 0 : i32
    %c0_i32_1 = arith.constant 0 : i32
    return %c0_i32, %c0_i32_0 : i32, i32
  }
  func.func @transform_6(%arg0: i32) -> (i32, i32) {
    %c0_i32 = arith.constant 0 : i32
    %c0_i32_0 = arith.constant 0 : i32
    %c0_i32_1 = arith.constant 0 : i32
    return %c0_i32, %c0_i32_0 : i32, i32
  }
  func.func @transform_7(%arg0: i32) -> (i32, i32) {
    %c0_i32 = arith.constant 0 : i32
    %c0_i32_0 = arith.constant 0 : i32
    %c0_i32_1 = arith.constant 0 : i32
    return %c0_i32, %c0_i32_0 : i32, i32
  }
  func.func @transform_8(%arg0: i32) -> (i32, i32) {
    %c0_i32 = arith.constant 0 : i32
    %c0_i32_0 = arith.constant 0 : i32
    %c0_i32_1 = arith.constant 0 : i32
    return %c0_i32, %c0_i32_0 : i32, i32
  }
  func.func @transform_9(%arg0: i32) -> (i32, i32) {
    %c0_i32 = arith.constant 0 : i32
    %c0_i32_0 = arith.constant 0 : i32
    %c0_i32_1 = arith.constant 0 : i32
    return %c0_i32, %c0_i32_0 : i32, i32
  }
  func.func @transform_10(%arg0: i32) -> (i32, i32) {
    %c0_i32 = arith.constant 0 : i32
    %c0_i32_0 = arith.constant 0 : i32
    %c0_i32_1 = arith.constant 0 : i32
    return %c0_i32, %c0_i32_0 : i32, i32
  }
  func.func @transform_11(%arg0: i32) -> (i32, i32) {
    %c0_i32 = arith.constant 0 : i32
    %c0_i32_0 = arith.constant 0 : i32
    return %c0_i32, %arg0 : i32, i32
  }
}

</mosaic_0001>

<bundles_post_ra>
// kernel: gpnet2_2_3_forward.1
= control target key start
LH: loop header
LB: loop body
LE: loop exit
PB: predicated region body
PF: predicated region fallthrough
CT: control target
= control target key end

     0   :  { %s1572_s17 = smov 0   ;;  %s1694_s0 = inlined_call_operand.vmem [shape: f32[8,1024], index: 0, kind: input, shape index: {}]   ;;  %s1695_s1 = inlined_call_operand.vmem [shape: f32[32,8], index: 1, kind: input, shape index: {}]   ;;  %s1696_s2 = inlined_call_operand.vmem [shape: f32[32,1], index: 2, kind: input, shape index: {}]   ;;  %s1697_s3 = inlined_call_operand.vmem [shape: f32[24,32], index: 3, kind: input, shape index: {}]   ;;  %s1698_s4 = inlined_call_operand.vmem [shape: f32[24,1], index: 4, kind: input, shape index: {}]   ;;  %s1699_s5 = inlined_call_operand.vmem [shape: f32[8,24], index: 5, kind: input, shape index: {}]   ;;  %s1700_s6 = inlined_call_operand.vmem [shape: f32[8,1], index: 6, kind: input, shape index: {}]   ;;  %s1701_s7 = inlined_call_operand.vmem [shape: f32[8,8], index: 7, kind: input, shape index: {}]   ;;  %s1702_s8 = inlined_call_operand.vmem [shape: f32[8,1], index: 8, kind: input, shape index: {}]   ;;  %s1703_s9 = inlined_call_operand.vmem [shape: f32[8,8], index: 9, kind: input, shape index: {}]   ;;  %s1704_s10 = inlined_call_operand.vmem [shape: f32[8,1], index: 10, kind: input, shape index: {}]   ;;  %s1705_s11 = inlined_call_operand.vmem [shape: f32[8,1024], index: 11, kind: output, shape index: {}]  }
   0x1 LB: > { %s1379_s18 = sadd.s32 4294967295, %s1508_s17   ;;  %p1383_p0 = scmp.ge.s32.totalorder %s1508_s17, 1  ;;  %s1508_s17 = sphi %s1572_s17, %s21_s17  }
   0x2   : > { %p338_p1 = scmp.lt.s32.totalorder %s1508_s17, 3 }
   0x4   : > { %p339_p2 = pnand %p1383_p0, %p338_p1 }
   0x5   : > { %s1384_s19 = sshll.u32 (!%p339_p2), %s1379_s18, 2 }
   0x6   : > { %342 = sbr.rel (%p339_p2) target bundleno = 1118 (0x45e), region = 64  ;;  %p379_p3 = scmp.lt.s32.totalorder (!%p339_p2), %s1384_s19, 7 }
   0xb   : > { %v1510_v0 = vmov 0.0   ;;  %v399_v1 = vld [vmem:[%s1696_s2 + $0x8] sm:$0xff]  ;;  %v401_v2 = vld [vmem:[%s1696_s2 + $0x18] sm:$0xff]  ;;  %v1511_v3 = vmov 0   ;;  %s1707_s19 = smov (!%p379_p3, %s1384_s19), 7  ;;  %v398_v4 = vld [vmem:[%s1696_s2] sm:$0xff] }
   0xc   : > { %499 = vmatprep.mubr.f32.mxu0 %v1510_v0  ;;  %588 = vmatprep.mubr.f32.mxu1 %v1510_v0  ;;  %v400_v5 = vld [vmem:[%s1696_s2 + $0x10] sm:$0xff]  ;;  %s1385_s28 = sshll.u32 %s1707_s19, 3  ;;  %v394_v6 = vld [vmem:[%s1695_s1] sm:$0xff]  ;;  %vm422_vm0 = vcmask 64512   ;;  %v633_v12 = vld [vmem:[%s1698_s4 + $0x8] sm:$0xff]  ;;  %vm650_vm1 = vcmask 261120  }
   0xd   : > { %1421 = vset.pattern.permute.xlu1 %v1511_v3  ;;  %1420 = vset.pattern.permute.xlu0 %v1511_v3  ;;  %s382_s12 = scalar_lea.vmem %s1694_s0, %s1385_s28  ;;  %v634_v11 = vld [vmem:[%s1698_s4 + $0x10] sm:$0xff]  ;;  %v395_v13 = vld [vmem:[%s1695_s1 + $0x8] sm:$0xff]  ;;  %v632_v14 = vld [vmem:[%s1698_s4] sm:$0xff]  ;;  %vm845_vm2 = vcmask 195584   ;;  %s388_s15 = scalar_lea.vmem %s1705_s11, %s1385_s28 }
   0xe   : > { %409 = vperm.xlu1 %1421, %v399_v1   ;;  %419 = vperm.xlu0 %1420, %v401_v2   ;;  %v391_v7 = vld [vmem:[%s382_s12 + $0x8] sm:$0xff]  ;;  %v393_v8 = vld [vmem:[%s382_s12 + $0x18] sm:$0xff]  ;;  %v390_v9 = vld [vmem:[%s382_s12] sm:$0xff] }
   0xf   : > { %465 = vmatprep.subr.mxu0 %v391_v7  ;;  %554 = vmatprep.subr.mxu1 %v393_v8  ;;  %v392_v10 = vld [vmem:[%s382_s12 + $0x10] sm:$0xff]  ;;  %v839_v15 = vld [vmem:[%s1700_s6] sm:$0xff]  ;;  %v397_v19 = vld [vmem:[%s1695_s1 + $0x18] sm:$0xff] }
  0x10   : > { %466 = vmatpush1.msra.mxu0 %v390_v9  ;;  %555 = vmatpush1.msra.mxu1 %v392_v10  ;;  %v396_v16 = vld [vmem:[%s1695_s1 + $0x10] sm:$0xff]  ;;  %v996_v17 = vld [vmem:[%s1702_s8] sm:$0xff]  ;;  %v630_v10 = vld [vmem:[%s1697_s3 + $0x8] sm:$0xff] }
  0x11   : > { %1388 = vmatmul.mubr.msk.f32.vlgmr.msra.gmra.mxu0 %vm422_vm0, %v394_v6  ;;  %1392 = vmatmul.mubr.msk.f32.vlgmr.msra.gmra.mxu1 %vm422_vm0, %v394_v6  ;;  %v1168_v18 = vld [vmem:[%s1704_s10] sm:$0xff] }
  0x12   : > { %404 = vperm.xlu1 %1421, %v398_v4   ;;  %414 = vperm.xlu0 %1420, %v400_v5   ;;  %v629_v7 = vld [vmem:[%s1697_s3] sm:$0xff] }
  0x13   : > { %505 = vmatprep.mubr.f32.mxu0 %v1510_v0  ;;  %594 = vmatprep.mubr.f32.mxu1 %v1510_v0 }
  0x15   : > { %1389 = vmatmul.mubr.msk.f32.gmra.mxu0 %vm422_vm0, %v395_v13  ;;  %1393 = vmatmul.mubr.msk.f32.gmra.mxu1 %vm422_vm0, %v395_v13 }
  0x16   : > { %647 = vperm.xlu0 %1420, %v634_v11   ;;  %642 = vperm.xlu1 %1421, %v633_v12   ;;  %v631_v11 = vld [vmem:[%s1697_s3 + $0x10] sm:$0xff] }
  0x17   : > { %511 = vmatprep.mubr.f32.mxu0 %v1510_v0  ;;  %600 = vmatprep.mubr.f32.mxu1 %v1510_v0 }
  0x19   : > { %1390 = vmatmul.mubr.msk.f32.gmra.mxu0 %vm422_vm0, %v396_v16  ;;  %1394 = vmatmul.mubr.msk.f32.gmra.mxu1 %vm422_vm0, %v396_v16 }
  0x1a   : > { %637 = vperm.xlu0 %1420, %v632_v14   ;;  %842 = vperm.xlu1 %1421, %v839_v15  }
  0x1b   : > { %517 = vmatprep.mubr.f32.mxu0 %v1510_v0  ;;  %606 = vmatprep.mubr.f32.mxu1 %v1510_v0 }
  0x1d   : > { %1391 = vmatmul.mubr.msk.f32.gmra.mxu0 %vm422_vm0, %v397_v19  ;;  %1395 = vmatmul.mubr.msk.f32.gmra.mxu1 %vm422_vm0, %v397_v19 }
  0x1e   : > { %999 = vperm.xlu0 %1420, %v996_v17   ;;  %1171 = vperm.xlu1 %1421, %v1168_v18  }
  0x1f   : > { %724 = vmatprep.mubr.f32.mxu0 %v1510_v0  ;;  %807 = vmatprep.mubr.f32.mxu1 %v1510_v0 }
  0x89   : > { %v410_v20 = vpop.permute.xlu1 %409  ;;  %v420_v25 = vpop.permute.xlu0 %419 }
  0x8d   : > { %v405_v26 = vpop.permute.xlu1 %404  ;;  %v415_v36 = vpop.permute.xlu0 %414 }
  0x91   : > { %v648_v12 = vpop.permute.xlu0 %647 }
  0x95   : > { %v638_v16 = vpop.permute.xlu0 %637 }
  0xd1   : > { %v501_v21 = vpop.f32.mrf.mxu0  ;;  %v590_v22 = vpop.f32.mrf.mxu1 }
  0xd2   : > { %v502_v29 = vadd.f32 %v501_v21, %v405_v26  ;;  %v591_v55 = vadd.f32 %v590_v22, %v405_v26 }
  0xd3   : > { %v503_v23 = vpop.f32.mrf.mxu0  ;;  %v592_v24 = vpop.f32.mrf.mxu1 }
  0xd4   : > { %v504_v32 = vadd.f32 %v503_v23, %v405_v26  ;;  %1422 = vtanh.f32 %v502_v29  ;;  %v593_v54 = vadd.f32 %v592_v24, %v405_v26 }
  0xd5   : > { %v507_v27 = vpop.f32.mrf.mxu0  ;;  %v596_v28 = vpop.f32.mrf.mxu1 }
  0xd6   : > { %v508_v33 = vadd.f32 %v507_v27, %v410_v20  ;;  %1424 = vtanh.f32 %v504_v32  ;;  %v597_v53 = vadd.f32 %v596_v28, %v410_v20 }
  0xd7   : > { %v509_v30 = vpop.f32.mrf.mxu0  ;;  %v598_v31 = vpop.f32.mrf.mxu1 }
  0xd8   : > { %v510_v37 = vadd.f32 %v509_v30, %v410_v20  ;;  %1426 = vtanh.f32 %v508_v33  ;;  %v599_v52 = vadd.f32 %v598_v31, %v410_v20  ;;  %v643_v20 = vpop.permute.xlu1 %642 }
  0xd9   : > { %v513_v34 = vpop.f32.mrf.mxu0  ;;  %v602_v35 = vpop.f32.mrf.mxu1 }
  0xda   : > { %v514_v38 = vadd.f32 %v513_v34, %v415_v36  ;;  %1428 = vtanh.f32 %v510_v37  ;;  %v603_v51 = vadd.f32 %v602_v35, %v415_v36 }
  0xdb   : > { %v515_v39 = vpop.f32.mrf.mxu0  ;;  %v604_v40 = vpop.f32.mrf.mxu1 }
  0xdc   : > { %v516_v41 = vadd.f32 %v515_v39, %v415_v36  ;;  %1430 = vtanh.f32 %v514_v38  ;;  %v605_v50 = vadd.f32 %v604_v40, %v415_v36 }
  0xdd   : > { %v519_v42 = vpop.f32.mrf.mxu0  ;;  %v608_v43 = vpop.f32.mrf.mxu1 }
  0xde   : > { %v520_v44 = vadd.f32 %v519_v42, %v420_v25  ;;  %1432 = vtanh.f32 %v516_v41  ;;  %v609_v47 = vadd.f32 %v608_v43, %v420_v25 }
  0xdf   : > { %v521_v45 = vpop.f32.mrf.mxu0  ;;  %v610_v46 = vpop.f32.mrf.mxu1 }
  0xe0   : > { %v522_v48 = vadd.f32 %v521_v45, %v420_v25  ;;  %v611_v49 = vadd.f32 %v610_v46, %v420_v25  ;;  %1434 = vtanh.f32 %v520_v44 }
  0xe1   : > { %v1423_v56 = vpop.eup %1422 }
  0xe2   : > { %1436 = vtanh.f32 %v522_v48 }
  0xe3   : > { %1438 = vtanh.f32 %v611_v49  ;;  %v1425_v57 = vpop.eup %1424  ;;  %v838_v49 = vld [vmem:[%s1699_s5] sm:$0xff] }
  0xe4   : > { %1440 = vtanh.f32 %v609_v47 }
  0xe5   : > { %1442 = vtanh.f32 %v605_v50  ;;  %v1427_v58 = vpop.eup %1426 }
  0xe6   : > { %1444 = vtanh.f32 %v603_v51 }
  0xe7   : > { %1446 = vtanh.f32 %v599_v52  ;;  %v1429_v59 = vpop.eup %1428  ;;  %v843_v52 = vpop.permute.xlu1 %842 }
  0xe8   : > { %1448 = vtanh.f32 %v597_v53 }
  0xe9   : > { %1450 = vtanh.f32 %v593_v54  ;;  %v1431_v60 = vpop.eup %1430 }
  0xea   : > { %1452 = vtanh.f32 %v591_v55 }
  0xeb   : > { %v1433_v61 = vpop.eup %1432 }
  0xed   : > { %v1435_v62 = vpop.eup %1434 }
  0xef   : > { %v1437_v63 = vpop.eup %1436 }
  0xf0   : > { %v1439_v1 = vpop.eup %1438  ;;  %684 = vmatprep.subr.mxu0 %v1437_v63  ;;  %v995_v63 = vld [vmem:[%s1701_s7] sm:$0xff] }
  0xf1   : > { %v1441_v2 = vpop.eup %1440  ;;  %767 = vmatprep.subr.mxu1 %v1439_v1  ;;  %685 = vmatpush1.msra.mxu0 %v1435_v62 }
  0xf2   : > { %v1443_v3 = vpop.eup %1442  ;;  %768 = vmatpush1.msra.mxu1 %v1441_v2  ;;  %686 = vmatprep.subr.mxu0 %v1433_v61 }
  0xf3   : > { %v1445_v4 = vpop.eup %1444  ;;  %769 = vmatprep.subr.mxu1 %v1443_v3  ;;  %687 = vmatpush1.msra.mxu0 %v1431_v60  ;;  %v1000_v3 = vpop.permute.xlu0 %999 }
  0xf4   : > { %v1447_v5 = vpop.eup %1446  ;;  %770 = vmatpush1.msra.mxu1 %v1445_v4  ;;  %688 = vmatprep.subr.mxu0 %v1429_v59 }
  0xf5   : > { %v1449_v6 = vpop.eup %1448  ;;  %771 = vmatprep.subr.mxu1 %v1447_v5  ;;  %689 = vmatpush1.msra.mxu0 %v1427_v58 }
  0xf6   : > { %v1451_v8 = vpop.eup %1450  ;;  %772 = vmatpush1.msra.mxu1 %v1449_v6  ;;  %690 = vmatprep.subr.mxu0 %v1425_v57 }
  0xf7   : > { %v1453_v9 = vpop.eup %1452  ;;  %773 = vmatprep.subr.mxu1 %v1451_v8  ;;  %691 = vmatpush1.msra.mxu0 %v1423_v56 }
  0xf8   : > { %774 = vmatpush1.msra.mxu1 %v1453_v9  ;;  %1396 = vmatmul.mubr.msk.f32.vlgmr.msra.gmra.mxu0 %vm650_vm1, %v629_v7 }
  0xf9   : > { %1399 = vmatmul.mubr.msk.f32.vlgmr.msra.gmra.mxu1 %vm650_vm1, %v629_v7  ;;  %730 = vmatprep.mubr.f32.mxu0 %v1510_v0 }
  0xfa   : > { %813 = vmatprep.mubr.f32.mxu1 %v1510_v0 }
  0xfc   : > { %1397 = vmatmul.mubr.msk.f32.gmra.mxu0 %vm650_vm1, %v630_v10 }
  0xfd   : > { %1400 = vmatmul.mubr.msk.f32.gmra.mxu1 %vm650_vm1, %v630_v10  ;;  %736 = vmatprep.mubr.f32.mxu0 %v1510_v0 }
  0xfe   : > { %819 = vmatprep.mubr.f32.mxu1 %v1510_v0 }
 0x100   : > { %1398 = vmatmul.mubr.msk.f32.gmra.mxu0 %vm650_vm1, %v631_v11 }
 0x101   : > { %1401 = vmatmul.mubr.msk.f32.gmra.mxu1 %vm650_vm1, %v631_v11  ;;  %913 = vmatprep.mubr.f32.mxu0 %v1510_v0 }
 0x102   : > { %984 = vmatprep.mubr.f32.mxu1 %v1510_v0 }
 0x1b8   : > { %v726_v13 = vpop.f32.mrf.mxu0 }
 0x1b9   : > { %v809_v14 = vpop.f32.mrf.mxu1  ;;  %v727_v18 = vadd.f32 %v726_v13, %v638_v16 }
 0x1ba   : > { %v728_v15 = vpop.f32.mrf.mxu0  ;;  %v810_v38 = vadd.f32 %v809_v14, %v638_v16 }
 0x1bb   : > { %v811_v17 = vpop.f32.mrf.mxu1  ;;  %v729_v21 = vadd.f32 %v728_v15, %v638_v16  ;;  %1454 = vtanh.f32 %v727_v18 }
 0x1bc   : > { %v732_v19 = vpop.f32.mrf.mxu0  ;;  %v812_v37 = vadd.f32 %v811_v17, %v638_v16 }
 0x1bd   : > { %v815_v22 = vpop.f32.mrf.mxu1  ;;  %v733_v23 = vadd.f32 %v732_v19, %v643_v20  ;;  %1456 = vtanh.f32 %v729_v21 }
 0x1be   : > { %v734_v24 = vpop.f32.mrf.mxu0  ;;  %v816_v36 = vadd.f32 %v815_v22, %v643_v20 }
 0x1bf   : > { %v735_v25 = vadd.f32 %v734_v24, %v643_v20  ;;  %v817_v26 = vpop.f32.mrf.mxu1  ;;  %1458 = vtanh.f32 %v733_v23 }
 0x1c0   : > { %v738_v27 = vpop.f32.mrf.mxu0  ;;  %v818_v34 = vadd.f32 %v817_v26, %v643_v20 }
 0x1c1   : > { %v739_v28 = vadd.f32 %v738_v27, %v648_v12  ;;  %v821_v29 = vpop.f32.mrf.mxu1  ;;  %1460 = vtanh.f32 %v735_v25 }
 0x1c2   : > { %v740_v30 = vpop.f32.mrf.mxu0  ;;  %v822_v31 = vadd.f32 %v821_v29, %v648_v12  ;;  %v1167_v29 = vld [vmem:[%s1703_s9] sm:$0xff] }
 0x1c3   : > { %v741_v32 = vadd.f32 %v740_v30, %v648_v12  ;;  %v823_v33 = vpop.f32.mrf.mxu1  ;;  %1462 = vtanh.f32 %v739_v28 }
 0x1c4   : > { %v824_v35 = vadd.f32 %v823_v33, %v648_v12 }
 0x1c5   : > { %1464 = vtanh.f32 %v741_v32  ;;  %v1172_v32 = vpop.permute.xlu1 %1171 }
 0x1c6   : > { %1466 = vtanh.f32 %v824_v35 }
 0x1c7   : > { %1468 = vtanh.f32 %v822_v31 }
 0x1c8   : > { %1470 = vtanh.f32 %v818_v34  ;;  %v1455_v39 = vpop.eup %1454 }
 0x1c9   : > { %1472 = vtanh.f32 %v816_v36 }
 0x1ca   : > { %1474 = vtanh.f32 %v812_v37  ;;  %v1457_v40 = vpop.eup %1456 }
 0x1cb   : > { %1476 = vtanh.f32 %v810_v38 }
 0x1cc   : > { %v1459_v41 = vpop.eup %1458 }
 0x1ce   : > { %v1461_v42 = vpop.eup %1460 }
 0x1d0   : > { %v1463_v43 = vpop.eup %1462 }
 0x1d2   : > { %v1465_v44 = vpop.eup %1464 }
 0x1d3   : > { %v1467_v45 = vpop.eup %1466  ;;  %875 = vmatprep.subr.mxu0 %v1465_v44 }
 0x1d4   : > { %v1469_v46 = vpop.eup %1468  ;;  %946 = vmatprep.subr.mxu1 %v1467_v45  ;;  %876 = vmatpush1.msra.mxu0 %v1463_v43 }
 0x1d5   : > { %v1471_v47 = vpop.eup %1470  ;;  %947 = vmatpush1.msra.mxu1 %v1469_v46  ;;  %877 = vmatprep.subr.mxu0 %v1461_v42 }
 0x1d6   : > { %v1473_v48 = vpop.eup %1472  ;;  %948 = vmatprep.subr.mxu1 %v1471_v47  ;;  %878 = vmatpush1.msra.mxu0 %v1459_v41 }
 0x1d7   : > { %v1475_v50 = vpop.eup %1474  ;;  %949 = vmatpush1.msra.mxu1 %v1473_v48  ;;  %879 = vmatprep.subr.mxu0 %v1457_v40 }
 0x1d8   : > { %v1477_v51 = vpop.eup %1476  ;;  %950 = vmatprep.subr.mxu1 %v1475_v50  ;;  %880 = vmatpush1.msra.mxu0 %v1455_v39 }
 0x1d9   : > { %951 = vmatpush1.msra.mxu1 %v1477_v51  ;;  %1402 = vmatmul.mubr.msk.f32.vlgmr.msra.gmra.mxu0 %vm845_vm2, %v838_v49 }
 0x1da   : > { %1403 = vmatmul.mubr.msk.f32.vlgmr.msra.gmra.mxu1 %vm845_vm2, %v838_v49  ;;  %1069 = vmatprep.mubr.f32.mxu0 %v1510_v0 }
 0x1db   : > { %1140 = vmatprep.mubr.f32.mxu1 %v1510_v0 }
 0x299   : > { %v915_v53 = vpop.f32.mrf.mxu0 }
 0x29a   : > { %v916_v54 = vadd.f32 %v915_v53, %v843_v52  ;;  %v986_v55 = vpop.f32.mrf.mxu1 }
 0x29b   : > { %v917_v56 = vpop.f32.mrf.mxu0  ;;  %v987_v57 = vadd.f32 %v986_v55, %v843_v52 }
 0x29c   : > { %v918_v58 = vadd.f32 %v917_v56, %v843_v52  ;;  %v988_v59 = vpop.f32.mrf.mxu1  ;;  %1478 = vtanh.f32 %v916_v54 }
 0x29d   : > { %v989_v60 = vadd.f32 %v988_v59, %v843_v52 }
 0x29e   : > { %1480 = vtanh.f32 %v918_v58 }
 0x29f   : > { %1482 = vtanh.f32 %v989_v60 }
 0x2a0   : > { %1484 = vtanh.f32 %v987_v57 }
 0x2a9   : > { %v1479_v61 = vpop.eup %1478 }
 0x2ab   : > { %v1481_v62 = vpop.eup %1480 }
 0x2ac   : > { %v1483_v1 = vpop.eup %1482  ;;  %1035 = vmatprep.subr.mxu0 %v1481_v62 }
 0x2ad   : > { %v1485_v2 = vpop.eup %1484  ;;  %1106 = vmatprep.subr.mxu1 %v1483_v1  ;;  %1036 = vmatpush1.msra.mxu0 %v1479_v61 }
 0x2ae   : > { %1107 = vmatpush1.msra.mxu1 %v1485_v2  ;;  %1404 = vmatmul.mubr.msk.f32.vlgmr.msra.gmra.mxu0 %vm422_vm0, %v995_v63 }
 0x2af   : > { %1405 = vmatmul.mubr.msk.f32.vlgmr.msra.gmra.mxu1 %vm422_vm0, %v995_v63  ;;  %1241 = vmatprep.mubr.f32.mxu0 %v1510_v0 }
 0x2b0   : > { %1312 = vmatprep.mubr.f32.mxu1 %v1510_v0 }
 0x36e   : > { %v1071_v4 = vpop.f32.mrf.mxu0 }
 0x36f   : > { %v1072_v5 = vadd.f32 %v1071_v4, %v1000_v3  ;;  %v1142_v6 = vpop.f32.mrf.mxu1 }
 0x370   : > { %v1143_v7 = vadd.f32 %v1142_v6, %v1000_v3  ;;  %v1073_v8 = vpop.f32.mrf.mxu0 }
 0x371   : > { %v1147_v9 = vsub.f32 0.0, %v1072_v5  ;;  %v1074_v10 = vadd.f32 %v1073_v8, %v1000_v3  ;;  %v1144_v11 = vpop.f32.mrf.mxu1 }
 0x372   : > { %v1149_v12 = vsub.f32 0.0, %v1143_v7  ;;  %v1145_v13 = vadd.f32 %v1144_v11, %v1000_v3 }
 0x373   : > { %v1151_v14 = vmul.f32 1.442695, %v1147_v9  ;;  %v1148_v15 = vsub.f32 0.0, %v1074_v10 }
 0x374   : > { %v1155_v16 = vmul.f32 1.442695, %v1149_v12  ;;  %v1150_v17 = vsub.f32 0.0, %v1145_v13 }
 0x375   : > { %1486 = vpow2.f32 %v1151_v14  ;;  %v1153_v18 = vmul.f32 1.442695, %v1148_v15 }
 0x376   : > { %1488 = vpow2.f32 %v1155_v16  ;;  %v1157_v19 = vmul.f32 1.442695, %v1150_v17 }
 0x377   : > { %1490 = vpow2.f32 %v1153_v18 }
 0x378   : > { %1492 = vpow2.f32 %v1157_v19 }
 0x382   : > { %v1487_v0 = vpop.eup %1486 }
 0x383   : > { %v1489_v20 = vpop.eup %1488  ;;  %v1159_v21 = vadd.f32 1.0, %v1487_v0 }
 0x384   : > { %v1491_v22 = vpop.eup %1490  ;;  %v1161_v24 = vadd.f32 1.0, %v1489_v20 }
 0x385   : > { %v1493_v23 = vpop.eup %1492  ;;  %v1160_v25 = vadd.f32 1.0, %v1491_v22  ;;  %1494 = vrcp.f32 %v1159_v21 }
 0x386   : > { %v1162_v26 = vadd.f32 1.0, %v1493_v23 }
 0x387   : > { %1496 = vrcp.f32 %v1160_v25 }
 0x388   : > { %1498 = vrcp.f32 %v1162_v26 }
 0x389   : > { %1500 = vrcp.f32 %v1161_v24 }
 0x392   : > { %v1495_v27 = vpop.eup %1494 }
 0x394   : > { %v1497_v28 = vpop.eup %1496 }
 0x395   : > { %v1499_v30 = vpop.eup %1498  ;;  %1207 = vmatprep.subr.mxu0 %v1497_v28 }
 0x396   : > { %v1501_v31 = vpop.eup %1500  ;;  %1278 = vmatprep.subr.mxu1 %v1499_v30  ;;  %1208 = vmatpush1.msra.mxu0 %v1495_v27 }
 0x397   : > { %1279 = vmatpush1.msra.mxu1 %v1501_v31  ;;  %1406 = vmatmul.mubr.msk.f32.vlgmr.msra.gmra.mxu0 %vm422_vm0, %v1167_v29 }
 0x398   : > { %1407 = vmatmul.mubr.msk.f32.vlgmr.msra.gmra.mxu1 %vm422_vm0, %v1167_v29 }
 0x457   : > { %v1243_v33 = vpop.f32.mrf.mxu0 }
 0x458   : > { %v1244_v34 = vadd.f32 %v1243_v33, %v1172_v32  ;;  %v1314_v35 = vpop.f32.mrf.mxu1 }
 0x459   : > { %v1245_v36 = vpop.f32.mrf.mxu0  ;;  %v1315_v39 = vadd.f32 %v1314_v35, %v1172_v32 }
 0x45a   : > { %1319 = vst [vmem:[%s388_s15] sm:$0xff] %v1244_v34  ;;  %v1246_v37 = vadd.f32 %v1245_v36, %v1172_v32  ;;  %v1316_v38 = vpop.f32.mrf.mxu1 }
 0x45b   : > { %v1317_v40 = vadd.f32 %v1316_v38, %v1172_v32  ;;  %1321 = vst [vmem:[%s388_s15 + $0x10] sm:$0xff] %v1315_v39 }
 0x45c   : > { %1320 = vst [vmem:[%s388_s15 + $0x8] sm:$0xff] %v1246_v37 }
 0x45d   : > { %1322 = vst [vmem:[%s388_s15 + $0x18] sm:$0xff] %v1317_v40 }
 0x45e PF: > { %s21_s17 = sadd.s32 1, %s1508_s17  }
 0x45f   : > { %p18_p4 = scmp.ge.s32.totalorder %s21_s17, 4  }
 0x461   :  { %20 = sbr.rel (!%p18_p4) target bundleno = 1 (0x1), region = 94 }

</bundles_post_ra>
